<compile_context>
chip_gen: v7x
topology: tpu7x:2x2x1
jax: 0.10.0
libtpu: 0.0.40
codegen_flags: <defaults>
</compile_context>

<pallas_src>
import functools

import jax
import jax.numpy as jnp
from jax.experimental import pallas as pl
from jax.experimental.pallas import tpu as pltpu


def convblock_kernel(xwin_ref,
                     w1x_ref, b1_ref,
                     w2a_ref, w2b_ref, b2_ref,
                     w3a_ref, w3b_ref, w3c_ref, b3_ref,
                     w4a_ref, w4b_ref, w4c_ref, w4d_ref, b4_ref,
                     o_ref, *, compute_dtype, l_total, precision=None):
    f32 = jnp.float32
    W = xwin_ref.shape[-1]                  # TL + 12 (L-tile + 6-element halo each side)
    TL = o_ref.shape[-1]                    # stored L-tile width
    Co = b1_ref.shape[0]
    j = pl.program_id(1)

    # Window column p corresponds to global position j*TL - 6 + p.  Positions
    # outside [0, l_total) must act as the convs' zero padding, so intermediate
    # activations are masked to 0 there before feeding the next stage.
    pos = jax.lax.broadcasted_iota(jnp.int32, (1, W), 1) + (j * TL - 6)
    valid = jnp.logical_and(pos >= 0, pos < l_total)          # (1, W)

    def col7(src):
        # src: (Cs, W).  Pad once with the max halo (3) and stack the 7 shifted
        # views along the channel (sublane) axis -> (7*Cs, W).  The extra +-3 zero
        # halo only corrupts window columns that never reach the stored central TL.
        Cs = src.shape[0]
        z = jnp.zeros((Cs, 3), src.dtype)
        xp = jnp.concatenate([z, src, z], axis=1)              # (Cs, W + 6)
        return jnp.concatenate([xp[:, k:k + W] for k in range(7)], axis=0)

    def conv(pairs, b_ref, K):
        # 'same' conv of kernel size K: one MXU matmul per *source*, taken as a
        # contiguous row-slice of that source's shared K=7 im2col stack.
        P = (K - 1) // 2
        out = b_ref[...].astype(f32)                           # (Co, 1) broadcasts
        for w_ref, col in pairs:
            Cs = col.shape[0] // 7
            lo = (3 - P) * Cs
            out = out + jnp.dot(w_ref[...], col[lo:lo + K * Cs, :],
                                precision=precision,
                                preferred_element_type=f32)
        return out                                             # (Co, W) f32

    def emit(i, val):
        # ReLU + store the central TL columns straight into the output channel
        # slice (no final concat).  Lane-dense when TL is a multiple of 128.
        o_ref[0, i * Co:(i + 1) * Co, :] = jnp.maximum(val[:, 6:6 + TL],
                                                       0.0).astype(o_ref.dtype)

    def masked(val):
        # Zero out-of-range positions, cast to the MXU input dtype (intentional
        # bf16 truncation of activations on the fast path).
        return jnp.where(valid, val, 0.0).astype(compute_dtype)

    xcol = col7(xwin_ref[0, 0])                                # x window: compute_dtype, pre-zero-padded
    x1 = conv([(w1x_ref, xcol)], b1_ref, 1)
    emit(0, x1)

    x1col = col7(masked(x1))
    x2 = conv([(w2a_ref, x1col), (w2b_ref, xcol)], b2_ref, 3)
    emit(1, x2)

    x2col = col7(masked(x2))
    x3 = conv([(w3a_ref, x2col), (w3b_ref, x1col), (w3c_ref, xcol)], b3_ref, 5)
    emit(2, x3)

    x3col = col7(masked(x3))
    x4 = conv([(w4a_ref, x3col), (w4b_ref, x2col), (w4c_ref, x1col), (w4d_ref, xcol)],
              b4_ref, 7)
    emit(3, x4)
    # TODO(synk): for Cs >= 128, replace the materialized 7x stacks for x1/x2/x3
    # with per-tap matmuls on roll-shifted views (cuts activation VMEM ~7x), and
    # fuse conv4's four dots into one via a contiguous combined stack.


def pack_params(params, compute_dtype, c0_pad):
    """Split each torch-layout conv weight (Cout, Cin, K) along Cin per source and
    reorder to a (Co, K*Cs) matmul matrix whose columns follow the im2col row order
    (tap-major, channel-minor).  The x-source segment's channel dim is zero-padded
    to c0_pad so the stacks stay sublane-aligned.  Biases become (Co, 1) f32."""
    (w1, b1), (w2, b2), (w3, b3), (w4, b4) = params
    Co = w1.shape[0]
    C0 = w1.shape[1]

    def mat(w_seg, pad_to=None):                               # (Co, Cs, K) -> (Co, K*Cs)
        co, cs, k = w_seg.shape
        if pad_to is not None and pad_to > cs:
            w_seg = jnp.pad(w_seg, ((0, 0), (0, pad_to - cs), (0, 0)))
            cs = pad_to
        return jnp.transpose(w_seg, (0, 2, 1)).reshape(co, k * cs).astype(compute_dtype)

    def split(w, sizes):
        segs, off = [], 0
        for n, s in enumerate(sizes):
            pad_to = c0_pad if n == len(sizes) - 1 else None   # x is always the last source
            segs.append(mat(w[:, off:off + s, :], pad_to))
            off += s
        return segs

    def bias(b):
        return b.reshape(Co, 1).astype(jnp.float32)

    flat = []
    flat += split(w1, [C0]) + [bias(b1)]                       # conv1: sources [x]
    flat += split(w2, [Co, C0]) + [bias(b2)]                   # conv2: [x1, x]
    flat += split(w3, [Co, Co, C0]) + [bias(b3)]               # conv3: [x2, x1, x]
    flat += split(w4, [Co, Co, Co, C0]) + [bias(b4)]           # conv4: [x3, x2, x1, x]
    return flat


def conv_block_forward(x, params, *, compute_dtype=jnp.bfloat16, tile_l=1024,
                       precision=None):
    """x: (B, C_in, L) f32 (PyTorch NCL).  Returns (B, 4*Co, L) f32.

    Default is the fast path: bf16 MXU inputs with f32 accumulation/epilogue.
    Use compute_dtype=jnp.float32 (optionally precision=jax.lax.Precision.HIGHEST)
    for validation-grade accuracy.  tile_l is the target L tile per grid step
    (rounded to a multiple of 128); size per generation: ~1024-2048 on v7x,
    2048-4096 on v5e/v6e."""
    B, C0, L = x.shape
    Co = params[0][0].shape[0]

    # Sublane packing of the compute dtype; pad input channels so stacks/slices
    # stay tile-aligned.  (For best perf Co = length_out//4 should also be a
    # multiple of this packing.)
    pack = 16 if jnp.dtype(compute_dtype) == jnp.dtype(jnp.bfloat16) else 8
    C0p = ((C0 + pack - 1) // pack) * pack

    # L tiling; halo of 6 = compound receptive-field radius of conv2..conv4.
    if tile_l >= L:
        TL = L
    else:
        TL = max(128, (tile_l // 128) * 128)                   # lane-dense stores
    nL = (L + TL - 1) // TL
    Lp = nL * TL
    W = TL + 12

    flat = pack_params(params, compute_dtype, C0p)

    # Pre-pad x once (channel pad to C0p, 6-zero halo each side, right-pad to Lp)
    # and lay out the nL overlapping (C0p, TL+12) windows for plain Blocked specs.
    x_pad = jnp.zeros((B, C0p, Lp + 12), compute_dtype)
    x_pad = x_pad.at[:, :C0, 6:6 + L].set(x.astype(compute_dtype))
    xwin = jnp.stack([x_pad[:, :, j * TL:j * TL + W] for j in range(nL)], axis=1)

    def whole(arr):                                            # weights/biases: constant block
        zeros = (0,) * arr.ndim
        # TODO(synk): single-buffer these constant blocks (pipeline_mode=pl.Buffered(1))
        # to reclaim ~1x the weight VMEM once confirmed on the installed Pallas.
        return pl.BlockSpec(arr.shape, lambda b, j, _z=zeros: _z)

    in_specs = [pl.BlockSpec((1, 1, C0p, W), lambda b, j: (b, j, 0, 0))]
    in_specs += [whole(a) for a in flat]
    out_spec = pl.BlockSpec((1, 4 * Co, TL), lambda b, j: (b, 0, j))

    itemsize = jnp.dtype(compute_dtype).itemsize
    vmem_est = (2 * C0p * W * itemsize                          # x window (double-buffered)
                + 2 * sum(int(a.size) * a.dtype.itemsize for a in flat)
                + 2 * 4 * Co * TL * 4                           # output block (double-buffered)
                + 7 * (C0p + 3 * Co) * W * itemsize             # im2col stacks
                + 8 * Co * W * 4)                               # f32 intermediates / temps
    vmem_limit = int(min(max(32 * 1024 * 1024, 2 * vmem_est), 100 * 1024 * 1024))

    flops = 2 * B * Lp * Co * (C0p + 3 * (Co + C0p) + 5 * (2 * Co + C0p) + 7 * (3 * Co + C0p))
    bytes_accessed = (int(xwin.size) * itemsize + B * 4 * Co * Lp * 4
                      + sum(int(a.size) * a.dtype.itemsize for a in flat))

    kernel = functools.partial(convblock_kernel, compute_dtype=compute_dtype,
                               l_total=L, precision=precision)

    out = pl.pallas_call(
        kernel,
        out_shape=jax.ShapeDtypeStruct((B, 4 * Co, Lp), jnp.float32),
        grid=(B, nL),
        in_specs=in_specs,
        out_specs=out_spec,
        compiler_params=pltpu.CompilerParams(
            # Both axes independent (halo is recomputed per tile, no carried state).
            # TODO(synk): on v7x verify the grid shards across both TensorCores;
            # switch to pltpu.CORE_PARALLEL / pl.core_map if plain "parallel" doesn't.
            dimension_semantics=("parallel", "parallel"),
            vmem_limit_bytes=vmem_limit),
        cost_estimate=pl.CostEstimate(flops=flops, transcendentals=0,
                                      bytes_accessed=bytes_accessed),
    )(xwin, *flat)

    return out if Lp == L else out[:, :, :L]


def init_params(key, length_in, length_out):
    """Torch-layout params: per conv, weight (Cout, Cin, K) and bias (Cout,),
    uniform +/- 1/sqrt(Cin*K) like nn.Conv1d's default init."""
    co = length_out // 4
    cfgs = [(1, length_in), (3, co + length_in), (5, 2 * co + length_in),
            (7, 3 * co + length_in)]
    params = []
    for K, cin in cfgs:
        key, kw, kb = jax.random.split(key, 3)
        bound = 1.0 / float(cin * K) ** 0.5
        w = jax.random.uniform(kw, (co, cin, K), jnp.float32, -bound, bound)
        b = jax.random.uniform(kb, (co,), jnp.float32, -bound, bound)
        params.append((w, b))
    return params


# ---------------- pure-JAX reference (for correctness check) ----------------
def _conv1d_ref(x_ncl, w_oik, b, pad):
    out = jax.lax.conv_general_dilated(
        x_ncl, w_oik, window_strides=(1,), padding=[(pad, pad)],
        dimension_numbers=("NCH", "OIH", "NCH"))
    return out + b[None, :, None]


def conv_block_ref(x_ncl, params):
    (w1, b1), (w2, b2), (w3, b3), (w4, b4) = params
    x1 = _conv1d_ref(x_ncl, w1, b1, 0)
    x2 = _conv1d_ref(jnp.concatenate([x1, x_ncl], axis=1), w2, b2, 1)
    x3 = _conv1d_ref(jnp.concatenate([x2, x1, x_ncl], axis=1), w3, b3, 2)
    x4 = _conv1d_ref(jnp.concatenate([x3, x2, x1, x_ncl], axis=1), w4, b4, 3)
    return jax.nn.relu(jnp.concatenate([x1, x2, x3, x4], axis=1))


if __name__ == "__main__":
    key = jax.random.PRNGKey(0)

    # --- Small, module-consistent shapes: B=2, C_in=4, L=16, length_out=32 (Co=8).
    B, length_in, L = 2, 4, 16
    length_out = 32
    key, kx = jax.random.split(key)
    x = jax.random.normal(kx, (B, length_in, L), jnp.float32)   # PyTorch NCL input
    params = init_params(key, length_in, length_out)
    ref = conv_block_ref(x, params)

    # Default fast path: bf16 MXU inputs, f32 accumulation/epilogue.
    # (bf16 truncation of the chained activations is an intentional accuracy
    # tradeoff; hence the loose tolerance.)
    out_bf16 = jax.block_until_ready(conv_block_forward(x, params))
    assert out_bf16.shape == ref.shape, out_bf16.shape
    assert jnp.allclose(out_bf16, ref, atol=2e-1, rtol=2e-1), \
        float(jnp.max(jnp.abs(out_bf16 - ref)))

    # f32 validation path (pass precision=jax.lax.Precision.HIGHEST for guaranteed
    # tight accuracy at large C/L).
    out_f32 = jax.block_until_ready(
        conv_block_forward(x, params, compute_dtype=jnp.float32))
    assert jnp.allclose(out_f32, ref, atol=1e-3, rtol=1e-3), \
        float(jnp.max(jnp.abs(out_f32 - ref)))

    # --- Multi-tile L path (tile_l=128; L not a multiple of the tile exercises the
    #     halo recompute, boundary masks and right-edge truncation).
    L2 = 500
    key, kx2 = jax.random.split(key)
    x_big = jax.random.normal(kx2, (B, length_in, L2), jnp.float32)
    ref2 = conv_block_ref(x_big, params)

    out2_f32 = jax.block_until_ready(
        conv_block_forward(x_big, params, compute_dtype=jnp.float32, tile_l=128))
    assert out2_f32.shape == ref2.shape, out2_f32.shape
    assert jnp.allclose(out2_f32, ref2, atol=1e-3, rtol=1e-3), \
        float(jnp.max(jnp.abs(out2_f32 - ref2)))

    out2_bf16 = jax.block_until_ready(
        conv_block_forward(x_big, params, tile_l=128))
    assert jnp.allclose(out2_bf16, ref2, atol=2e-1, rtol=2e-1), \
        float(jnp.max(jnp.abs(out2_bf16 - ref2)))

    print("KERNEL_OK")
</pallas_src>

<mosaic_0001>
module attributes {stable_mosaic.version = 11 : i64} {
  func.func @convblock_kernel(%arg0: i32, %arg1: i32, %arg2: memref<1x1x16x28xbf16, #tpu.memory_space<vmem>>, %arg3: memref<8x16xbf16, #tpu.memory_space<vmem>>, %arg4: memref<8x1xf32, #tpu.memory_space<vmem>>, %arg5: memref<8x24xbf16, #tpu.memory_space<vmem>>, %arg6: memref<8x48xbf16, #tpu.memory_space<vmem>>, %arg7: memref<8x1xf32, #tpu.memory_space<vmem>>, %arg8: memref<8x40xbf16, #tpu.memory_space<vmem>>, %arg9: memref<8x40xbf16, #tpu.memory_space<vmem>>, %arg10: memref<8x80xbf16, #tpu.memory_space<vmem>>, %arg11: memref<8x1xf32, #tpu.memory_space<vmem>>, %arg12: memref<8x56xbf16, #tpu.memory_space<vmem>>, %arg13: memref<8x56xbf16, #tpu.memory_space<vmem>>, %arg14: memref<8x56xbf16, #tpu.memory_space<vmem>>, %arg15: memref<8x112xbf16, #tpu.memory_space<vmem>>, %arg16: memref<8x1xf32, #tpu.memory_space<vmem>>, %arg17: memref<1x32x16xf32, #tpu.memory_space<vmem>>) attributes {dimension_semantics = [#tpu.dimension_semantics<parallel>, #tpu.dimension_semantics<parallel>], iteration_bounds = array<i64: 2, 1>, scalar_prefetch = 0 : i64, scratch_operands = 0 : i64, tpu.core_type = #tpu.core_type<tc>, window_params = [{transform_indices = @transform_0, window_bounds = array<i64: 1, 1, 16, 28>}, {pipeline_mode = #tpu.pipeline_mode<synchronous>, transform_indices = @transform_1, window_bounds = array<i64: 8, 16>}, {pipeline_mode = #tpu.pipeline_mode<synchronous>, transform_indices = @transform_2, window_bounds = array<i64: 8, 1>}, {pipeline_mode = #tpu.pipeline_mode<synchronous>, transform_indices = @transform_3, window_bounds = array<i64: 8, 24>}, {pipeline_mode = #tpu.pipeline_mode<synchronous>, transform_indices = @transform_4, window_bounds = array<i64: 8, 48>}, {pipeline_mode = #tpu.pipeline_mode<synchronous>, transform_indices = @transform_5, window_bounds = array<i64: 8, 1>}, {pipeline_mode = #tpu.pipeline_mode<synchronous>, transform_indices = @transform_6, window_bounds = array<i64: 8, 40>}, {pipeline_mode = #tpu.pipeline_mode<synchronous>, transform_indices = @transform_7, window_bounds = array<i64: 8, 40>}, {pipeline_mode = #tpu.pipeline_mode<synchronous>, transform_indices = @transform_8, window_bounds = array<i64: 8, 80>}, {pipeline_mode = #tpu.pipeline_mode<synchronous>, transform_indices = @transform_9, window_bounds = array<i64: 8, 1>}, {pipeline_mode = #tpu.pipeline_mode<synchronous>, transform_indices = @transform_10, window_bounds = array<i64: 8, 56>}, {pipeline_mode = #tpu.pipeline_mode<synchronous>, transform_indices = @transform_11, window_bounds = array<i64: 8, 56>}, {pipeline_mode = #tpu.pipeline_mode<synchronous>, transform_indices = @transform_12, window_bounds = array<i64: 8, 56>}, {pipeline_mode = #tpu.pipeline_mode<synchronous>, transform_indices = @transform_13, window_bounds = array<i64: 8, 112>}, {pipeline_mode = #tpu.pipeline_mode<synchronous>, transform_indices = @transform_14, window_bounds = array<i64: 8, 1>}, {transform_indices = @transform_15, window_bounds = array<i64: 1, 32, 16>}]} {
    %0 = tpu.iota {dimensions = array<i32: 1>} : vector<1x28xi32>
    %c16_i32 = arith.constant 16 : i32
    %1 = arith.muli %arg1, %c16_i32 : i32
    %c6_i32 = arith.constant 6 : i32
    %2 = arith.subi %1, %c6_i32 : i32
    %3 = vector.broadcast %2 : i32 to vector<1x28xi32>
    %4 = arith.addi %0, %3 : vector<1x28xi32>
    %c0_i32 = arith.constant 0 : i32
    %5 = vector.broadcast %c0_i32 : i32 to vector<1x28xi32>
    %6 = arith.cmpi sge, %4, %5 : vector<1x28xi32>
    %c16_i32_0 = arith.constant 16 : i32
    %7 = vector.broadcast %c16_i32_0 : i32 to vector<1x28xi32>
    %8 = arith.cmpi slt, %4, %7 : vector<1x28xi32>
    %9 = arith.andi %6, %8 : vector<1x28xi1>
    %c0 = arith.constant 0 : index
    %c0_1 = arith.constant 0 : index
    %c0_2 = arith.constant 0 : index
    %c0_3 = arith.constant 0 : index
    %10 = vector.load %arg2[%c0, %c0_1, %c0_2, %c0_3] : memref<1x1x16x28xbf16, #tpu.memory_space<vmem>>, vector<1x1x16x28xbf16>
    %11 = vector.shape_cast %10 : vector<1x1x16x28xbf16> to vector<16x28xbf16>
    %cst = arith.constant 0.000000e+00 : bf16
    %12 = vector.broadcast %cst : bf16 to vector<16x3xbf16>
    %13 = tpu.concatenate %12, %11, %12 in 1 : vector<16x3xbf16>, vector<16x28xbf16>, vector<16x3xbf16> -> vector<16x34xbf16>
    %14 = vector.extract_strided_slice %13 {offsets = [0, 0], sizes = [16, 28], strides = [1, 1]} : vector<16x34xbf16> to vector<16x28xbf16>
    %15 = vector.extract_strided_slice %13 {offsets = [0, 1], sizes = [16, 28], strides = [1, 1]} : vector<16x34xbf16> to vector<16x28xbf16>
    %16 = vector.extract_strided_slice %13 {offsets = [0, 2], sizes = [16, 28], strides = [1, 1]} : vector<16x34xbf16> to vector<16x28xbf16>
    %17 = vector.extract_strided_slice %13 {offsets = [0, 3], sizes = [16, 28], strides = [1, 1]} : vector<16x34xbf16> to vector<16x28xbf16>
    %18 = vector.extract_strided_slice %13 {offsets = [0, 4], sizes = [16, 28], strides = [1, 1]} : vector<16x34xbf16> to vector<16x28xbf16>
    %19 = vector.extract_strided_slice %13 {offsets = [0, 5], sizes = [16, 28], strides = [1, 1]} : vector<16x34xbf16> to vector<16x28xbf16>
    %20 = vector.extract_strided_slice %13 {offsets = [0, 6], sizes = [16, 28], strides = [1, 1]} : vector<16x34xbf16> to vector<16x28xbf16>
    %21 = tpu.concatenate %14, %15, %16, %17, %18, %19, %20 in 0 : vector<16x28xbf16>, vector<16x28xbf16>, vector<16x28xbf16>, vector<16x28xbf16>, vector<16x28xbf16>, vector<16x28xbf16>, vector<16x28xbf16> -> vector<112x28xbf16>
    %c0_4 = arith.constant 0 : index
    %c0_5 = arith.constant 0 : index
    %22 = vector.load %arg4[%c0_4, %c0_5] : memref<8x1xf32, #tpu.memory_space<vmem>>, vector<8x1xf32>
    %c0_6 = arith.constant 0 : index
    %c0_7 = arith.constant 0 : index
    %23 = vector.load %arg3[%c0_6, %c0_7] : memref<8x16xbf16, #tpu.memory_space<vmem>>, vector<8x16xbf16>
    %24 = vector.extract_strided_slice %21 {offsets = [48, 0], sizes = [16, 28], strides = [1, 1]} : vector<112x28xbf16> to vector<16x28xbf16>
    %cst_8 = arith.constant dense<0.000000e+00> : vector<8x28xf32>
    %25 = tpu.matmul %23, %24, %cst_8 {dimension_numbers = #tpu.dot_dimension_numbers<[1], [0], [0], [1], [0, 0, 1, 1], [], []>} : vector<8x16xbf16>, vector<16x28xbf16>, vector<8x28xf32> -> vector<8x28xf32>
    %26 = vector.broadcast %22 : vector<8x1xf32> to vector<8x28xf32>
    %27 = arith.addf %26, %25 : vector<8x28xf32>
    %28 = vector.extract_strided_slice %27 {offsets = [0, 6], sizes = [8, 16], strides = [1, 1]} : vector<8x28xf32> to vector<8x16xf32>
    %cst_9 = arith.constant 0.000000e+00 : f32
    %29 = vector.broadcast %cst_9 : f32 to vector<8x16xf32>
    %30 = arith.maximumf %28, %29 : vector<8x16xf32>
    %c0_10 = arith.constant 0 : index
    %c0_11 = arith.constant 0 : index
    %c0_12 = arith.constant 0 : index
    %31 = vector.load %arg17[%c0_10, %c0_11, %c0_12] : memref<1x32x16xf32, #tpu.memory_space<vmem>>, vector<1x8x16xf32>
    %32 = vector.shape_cast %31 : vector<1x8x16xf32> to vector<8x16xf32>
    %33 = vector.shape_cast %30 : vector<8x16xf32> to vector<1x8x16xf32>
    tpu.vector_store %arg17[%c0_10, %c0_11, %c0_12], %33 {strides = array<i32>} : memref<1x32x16xf32, #tpu.memory_space<vmem>>, vector<1x8x16xf32>,
    %cst_13 = arith.constant 0.000000e+00 : f32
    %34 = vector.shape_cast %9 : vector<1x28xi1> to vector<1x28xi1>
    %35 = vector.broadcast %34 : vector<1x28xi1> to vector<8x28xi1>
    %36 = vector.broadcast %cst_13 : f32 to vector<8x28xf32>
    %37 = arith.select %35, %27, %36 : vector<8x28xi1>, vector<8x28xf32>
    %38 = arith.truncf %37 : vector<8x28xf32> to vector<8x28xbf16>
    %cst_14 = arith.constant 0.000000e+00 : bf16
    %39 = vector.broadcast %cst_14 : bf16 to vector<8x3xbf16>
    %40 = tpu.concatenate %39, %38, %39 in 1 : vector<8x3xbf16>, vector<8x28xbf16>, vector<8x3xbf16> -> vector<8x34xbf16>
    %41 = vector.extract_strided_slice %40 {offsets = [0, 0], sizes = [8, 28], strides = [1, 1]} : vector<8x34xbf16> to vector<8x28xbf16>
    %42 = vector.extract_strided_slice %40 {offsets = [0, 1], sizes = [8, 28], strides = [1, 1]} : vector<8x34xbf16> to vector<8x28xbf16>
    %43 = vector.extract_strided_slice %40 {offsets = [0, 2], sizes = [8, 28], strides = [1, 1]} : vector<8x34xbf16> to vector<8x28xbf16>
    %44 = vector.extract_strided_slice %40 {offsets = [0, 3], sizes = [8, 28], strides = [1, 1]} : vector<8x34xbf16> to vector<8x28xbf16>
    %45 = vector.extract_strided_slice %40 {offsets = [0, 4], sizes = [8, 28], strides = [1, 1]} : vector<8x34xbf16> to vector<8x28xbf16>
    %46 = vector.extract_strided_slice %40 {offsets = [0, 5], sizes = [8, 28], strides = [1, 1]} : vector<8x34xbf16> to vector<8x28xbf16>
    %47 = vector.extract_strided_slice %40 {offsets = [0, 6], sizes = [8, 28], strides = [1, 1]} : vector<8x34xbf16> to vector<8x28xbf16>
    %48 = tpu.concatenate %41, %42, %43, %44, %45, %46, %47 in 0 : vector<8x28xbf16>, vector<8x28xbf16>, vector<8x28xbf16>, vector<8x28xbf16>, vector<8x28xbf16>, vector<8x28xbf16>, vector<8x28xbf16> -> vector<56x28xbf16>
    %c0_15 = arith.constant 0 : index
    %c0_16 = arith.constant 0 : index
    %49 = vector.load %arg7[%c0_15, %c0_16] : memref<8x1xf32, #tpu.memory_space<vmem>>, vector<8x1xf32>
    %c0_17 = arith.constant 0 : index
    %c0_18 = arith.constant 0 : index
    %50 = vector.load %arg5[%c0_17, %c0_18] : memref<8x24xbf16, #tpu.memory_space<vmem>>, vector<8x24xbf16>
    %51 = vector.extract_strided_slice %48 {offsets = [16, 0], sizes = [24, 28], strides = [1, 1]} : vector<56x28xbf16> to vector<24x28xbf16>
    %cst_19 = arith.constant dense<0.000000e+00> : vector<8x28xf32>
    %52 = tpu.matmul %50, %51, %cst_19 {dimension_numbers = #tpu.dot_dimension_numbers<[1], [0], [0], [1], [0, 0, 1, 1], [], []>} : vector<8x24xbf16>, vector<24x28xbf16>, vector<8x28xf32> -> vector<8x28xf32>
    %53 = vector.broadcast %49 : vector<8x1xf32> to vector<8x28xf32>
    %54 = arith.addf %53, %52 : vector<8x28xf32>
    %c0_20 = arith.constant 0 : index
    %c0_21 = arith.constant 0 : index
    %55 = vector.load %arg6[%c0_20, %c0_21] : memref<8x48xbf16, #tpu.memory_space<vmem>>, vector<8x48xbf16>
    %56 = vector.extract_strided_slice %21 {offsets = [32, 0], sizes = [48, 28], strides = [1, 1]} : vector<112x28xbf16> to vector<48x28xbf16>
    %cst_22 = arith.constant dense<0.000000e+00> : vector<8x28xf32>
    %57 = tpu.matmul %55, %56, %cst_22 {dimension_numbers = #tpu.dot_dimension_numbers<[1], [0], [0], [1], [0, 0, 1, 1], [], []>} : vector<8x48xbf16>, vector<48x28xbf16>, vector<8x28xf32> -> vector<8x28xf32>
    %58 = arith.addf %54, %57 : vector<8x28xf32>
    %59 = vector.extract_strided_slice %58 {offsets = [0, 6], sizes = [8, 16], strides = [1, 1]} : vector<8x28xf32> to vector<8x16xf32>
    %cst_23 = arith.constant 0.000000e+00 : f32
    %60 = vector.broadcast %cst_23 : f32 to vector<8x16xf32>
    %61 = arith.maximumf %59, %60 : vector<8x16xf32>
    %c0_24 = arith.constant 0 : index
    %c8 = arith.constant 8 : index
    %c0_25 = arith.constant 0 : index
    %62 = vector.load %arg17[%c0_24, %c8, %c0_25] : memref<1x32x16xf32, #tpu.memory_space<vmem>>, vector<1x8x16xf32>
    %63 = vector.shape_cast %62 : vector<1x8x16xf32> to vector<8x16xf32>
    %64 = vector.shape_cast %61 : vector<8x16xf32> to vector<1x8x16xf32>
    tpu.vector_store %arg17[%c0_24, %c8, %c0_25], %64 {strides = array<i32>} : memref<1x32x16xf32, #tpu.memory_space<vmem>>, vector<1x8x16xf32>,
    %cst_26 = arith.constant 0.000000e+00 : f32
    %65 = vector.shape_cast %9 : vector<1x28xi1> to vector<1x28xi1>
    %66 = vector.broadcast %65 : vector<1x28xi1> to vector<8x28xi1>
    %67 = vector.broadcast %cst_26 : f32 to vector<8x28xf32>
    %68 = arith.select %66, %58, %67 : vector<8x28xi1>, vector<8x28xf32>
    %69 = arith.truncf %68 : vector<8x28xf32> to vector<8x28xbf16>
    %cst_27 = arith.constant 0.000000e+00 : bf16
    %70 = vector.broadcast %cst_27 : bf16 to vector<8x3xbf16>
    %71 = tpu.concatenate %70, %69, %70 in 1 : vector<8x3xbf16>, vector<8x28xbf16>, vector<8x3xbf16> -> vector<8x34xbf16>
    %72 = vector.extract_strided_slice %71 {offsets = [0, 0], sizes = [8, 28], strides = [1, 1]} : vector<8x34xbf16> to vector<8x28xbf16>
    %73 = vector.extract_strided_slice %71 {offsets = [0, 1], sizes = [8, 28], strides = [1, 1]} : vector<8x34xbf16> to vector<8x28xbf16>
    %74 = vector.extract_strided_slice %71 {offsets = [0, 2], sizes = [8, 28], strides = [1, 1]} : vector<8x34xbf16> to vector<8x28xbf16>
    %75 = vector.extract_strided_slice %71 {offsets = [0, 3], sizes = [8, 28], strides = [1, 1]} : vector<8x34xbf16> to vector<8x28xbf16>
    %76 = vector.extract_strided_slice %71 {offsets = [0, 4], sizes = [8, 28], strides = [1, 1]} : vector<8x34xbf16> to vector<8x28xbf16>
    %77 = vector.extract_strided_slice %71 {offsets = [0, 5], sizes = [8, 28], strides = [1, 1]} : vector<8x34xbf16> to vector<8x28xbf16>
    %78 = vector.extract_strided_slice %71 {offsets = [0, 6], sizes = [8, 28], strides = [1, 1]} : vector<8x34xbf16> to vector<8x28xbf16>
    %79 = tpu.concatenate %72, %73, %74, %75, %76, %77, %78 in 0 : vector<8x28xbf16>, vector<8x28xbf16>, vector<8x28xbf16>, vector<8x28xbf16>, vector<8x28xbf16>, vector<8x28xbf16>, vector<8x28xbf16> -> vector<56x28xbf16>
    %c0_28 = arith.constant 0 : index
    %c0_29 = arith.constant 0 : index
    %80 = vector.load %arg11[%c0_28, %c0_29] : memref<8x1xf32, #tpu.memory_space<vmem>>, vector<8x1xf32>
    %c0_30 = arith.constant 0 : index
    %c0_31 = arith.constant 0 : index
    %81 = vector.load %arg8[%c0_30, %c0_31] : memref<8x40xbf16, #tpu.memory_space<vmem>>, vector<8x40xbf16>
    %82 = vector.extract_strided_slice %79 {offsets = [8, 0], sizes = [40, 28], strides = [1, 1]} : vector<56x28xbf16> to vector<40x28xbf16>
    %cst_32 = arith.constant dense<0.000000e+00> : vector<8x28xf32>
    %83 = tpu.matmul %81, %82, %cst_32 {dimension_numbers = #tpu.dot_dimension_numbers<[1], [0], [0], [1], [0, 0, 1, 1], [], []>} : vector<8x40xbf16>, vector<40x28xbf16>, vector<8x28xf32> -> vector<8x28xf32>
    %84 = vector.broadcast %80 : vector<8x1xf32> to vector<8x28xf32>
    %85 = arith.addf %84, %83 : vector<8x28xf32>
    %c0_33 = arith.constant 0 : index
    %c0_34 = arith.constant 0 : index
    %86 = vector.load %arg9[%c0_33, %c0_34] : memref<8x40xbf16, #tpu.memory_space<vmem>>, vector<8x40xbf16>
    %87 = vector.extract_strided_slice %48 {offsets = [8, 0], sizes = [40, 28], strides = [1, 1]} : vector<56x28xbf16> to vector<40x28xbf16>
    %cst_35 = arith.constant dense<0.000000e+00> : vector<8x28xf32>
    %88 = tpu.matmul %86, %87, %cst_35 {dimension_numbers = #tpu.dot_dimension_numbers<[1], [0], [0], [1], [0, 0, 1, 1], [], []>} : vector<8x40xbf16>, vector<40x28xbf16>, vector<8x28xf32> -> vector<8x28xf32>
    %89 = arith.addf %85, %88 : vector<8x28xf32>
    %c0_36 = arith.constant 0 : index
    %c0_37 = arith.constant 0 : index
    %90 = vector.load %arg10[%c0_36, %c0_37] : memref<8x80xbf16, #tpu.memory_space<vmem>>, vector<8x80xbf16>
    %91 = vector.extract_strided_slice %21 {offsets = [16, 0], sizes = [80, 28], strides = [1, 1]} : vector<112x28xbf16> to vector<80x28xbf16>
    %cst_38 = arith.constant dense<0.000000e+00> : vector<8x28xf32>
    %92 = tpu.matmul %90, %91, %cst_38 {dimension_numbers = #tpu.dot_dimension_numbers<[1], [0], [0], [1], [0, 0, 1, 1], [], []>} : vector<8x80xbf16>, vector<80x28xbf16>, vector<8x28xf32> -> vector<8x28xf32>
    %93 = arith.addf %89, %92 : vector<8x28xf32>
    %94 = vector.extract_strided_slice %93 {offsets = [0, 6], sizes = [8, 16], strides = [1, 1]} : vector<8x28xf32> to vector<8x16xf32>
    %cst_39 = arith.constant 0.000000e+00 : f32
    %95 = vector.broadcast %cst_39 : f32 to vector<8x16xf32>
    %96 = arith.maximumf %94, %95 : vector<8x16xf32>
    %c0_40 = arith.constant 0 : index
    %c16 = arith.constant 16 : index
    %c0_41 = arith.constant 0 : index
    %97 = vector.load %arg17[%c0_40, %c16, %c0_41] : memref<1x32x16xf32, #tpu.memory_space<vmem>>, vector<1x8x16xf32>
    %98 = vector.shape_cast %97 : vector<1x8x16xf32> to vector<8x16xf32>
    %99 = vector.shape_cast %96 : vector<8x16xf32> to vector<1x8x16xf32>
    tpu.vector_store %arg17[%c0_40, %c16, %c0_41], %99 {strides = array<i32>} : memref<1x32x16xf32, #tpu.memory_space<vmem>>, vector<1x8x16xf32>,
    %cst_42 = arith.constant 0.000000e+00 : f32
    %100 = vector.shape_cast %9 : vector<1x28xi1> to vector<1x28xi1>
    %101 = vector.broadcast %100 : vector<1x28xi1> to vector<8x28xi1>
    %102 = vector.broadcast %cst_42 : f32 to vector<8x28xf32>
    %103 = arith.select %101, %93, %102 : vector<8x28xi1>, vector<8x28xf32>
    %104 = arith.truncf %103 : vector<8x28xf32> to vector<8x28xbf16>
    %cst_43 = arith.constant 0.000000e+00 : bf16
    %105 = vector.broadcast %cst_43 : bf16 to vector<8x3xbf16>
    %106 = tpu.concatenate %105, %104, %105 in 1 : vector<8x3xbf16>, vector<8x28xbf16>, vector<8x3xbf16> -> vector<8x34xbf16>
    %107 = vector.extract_strided_slice %106 {offsets = [0, 0], sizes = [8, 28], strides = [1, 1]} : vector<8x34xbf16> to vector<8x28xbf16>
    %108 = vector.extract_strided_slice %106 {offsets = [0, 1], sizes = [8, 28], strides = [1, 1]} : vector<8x34xbf16> to vector<8x28xbf16>
    %109 = vector.extract_strided_slice %106 {offsets = [0, 2], sizes = [8, 28], strides = [1, 1]} : vector<8x34xbf16> to vector<8x28xbf16>
    %110 = vector.extract_strided_slice %106 {offsets = [0, 3], sizes = [8, 28], strides = [1, 1]} : vector<8x34xbf16> to vector<8x28xbf16>
    %111 = vector.extract_strided_slice %106 {offsets = [0, 4], sizes = [8, 28], strides = [1, 1]} : vector<8x34xbf16> to vector<8x28xbf16>
    %112 = vector.extract_strided_slice %106 {offsets = [0, 5], sizes = [8, 28], strides = [1, 1]} : vector<8x34xbf16> to vector<8x28xbf16>
    %113 = vector.extract_strided_slice %106 {offsets = [0, 6], sizes = [8, 28], strides = [1, 1]} : vector<8x34xbf16> to vector<8x28xbf16>
    %114 = tpu.concatenate %107, %108, %109, %110, %111, %112, %113 in 0 : vector<8x28xbf16>, vector<8x28xbf16>, vector<8x28xbf16>, vector<8x28xbf16>, vector<8x28xbf16>, vector<8x28xbf16>, vector<8x28xbf16> -> vector<56x28xbf16>
    %c0_44 = arith.constant 0 : index
    %c0_45 = arith.constant 0 : index
    %115 = vector.load %arg16[%c0_44, %c0_45] : memref<8x1xf32, #tpu.memory_space<vmem>>, vector<8x1xf32>
    %c0_46 = arith.constant 0 : index
    %c0_47 = arith.constant 0 : index
    %116 = vector.load %arg12[%c0_46, %c0_47] : memref<8x56xbf16, #tpu.memory_space<vmem>>, vector<8x56xbf16>
    %cst_48 = arith.constant dense<0.000000e+00> : vector<8x28xf32>
    %117 = tpu.matmul %116, %114, %cst_48 {dimension_numbers = #tpu.dot_dimension_numbers<[1], [0], [0], [1], [0, 0, 1, 1], [], []>} : vector<8x56xbf16>, vector<56x28xbf16>, vector<8x28xf32> -> vector<8x28xf32>
    %118 = vector.broadcast %115 : vector<8x1xf32> to vector<8x28xf32>
    %119 = arith.addf %118, %117 : vector<8x28xf32>
    %c0_49 = arith.constant 0 : index
    %c0_50 = arith.constant 0 : index
    %120 = vector.load %arg13[%c0_49, %c0_50] : memref<8x56xbf16, #tpu.memory_space<vmem>>, vector<8x56xbf16>
    %cst_51 = arith.constant dense<0.000000e+00> : vector<8x28xf32>
    %121 = tpu.matmul %120, %79, %cst_51 {dimension_numbers = #tpu.dot_dimension_numbers<[1], [0], [0], [1], [0, 0, 1, 1], [], []>} : vector<8x56xbf16>, vector<56x28xbf16>, vector<8x28xf32> -> vector<8x28xf32>
    %122 = arith.addf %119, %121 : vector<8x28xf32>
    %c0_52 = arith.constant 0 : index
    %c0_53 = arith.constant 0 : index
    %123 = vector.load %arg14[%c0_52, %c0_53] : memref<8x56xbf16, #tpu.memory_space<vmem>>, vector<8x56xbf16>
    %cst_54 = arith.constant dense<0.000000e+00> : vector<8x28xf32>
    %124 = tpu.matmul %123, %48, %cst_54 {dimension_numbers = #tpu.dot_dimension_numbers<[1], [0], [0], [1], [0, 0, 1, 1], [], []>} : vector<8x56xbf16>, vector<56x28xbf16>, vector<8x28xf32> -> vector<8x28xf32>
    %125 = arith.addf %122, %124 : vector<8x28xf32>
    %c0_55 = arith.constant 0 : index
    %c0_56 = arith.constant 0 : index
    %126 = vector.load %arg15[%c0_55, %c0_56] : memref<8x112xbf16, #tpu.memory_space<vmem>>, vector<8x112xbf16>
    %cst_57 = arith.constant dense<0.000000e+00> : vector<8x28xf32>
    %127 = tpu.matmul %126, %21, %cst_57 {dimension_numbers = #tpu.dot_dimension_numbers<[1], [0], [0], [1], [0, 0, 1, 1], [], []>} : vector<8x112xbf16>, vector<112x28xbf16>, vector<8x28xf32> -> vector<8x28xf32>
    %128 = arith.addf %125, %127 : vector<8x28xf32>
    %129 = vector.extract_strided_slice %128 {offsets = [0, 6], sizes = [8, 16], strides = [1, 1]} : vector<8x28xf32> to vector<8x16xf32>
    %cst_58 = arith.constant 0.000000e+00 : f32
    %130 = vector.broadcast %cst_58 : f32 to vector<8x16xf32>
    %131 = arith.maximumf %129, %130 : vector<8x16xf32>
    %c0_59 = arith.constant 0 : index
    %c24 = arith.constant 24 : index
    %c0_60 = arith.constant 0 : index
    %132 = vector.load %arg17[%c0_59, %c24, %c0_60] : memref<1x32x16xf32, #tpu.memory_space<vmem>>, vector<1x8x16xf32>
    %133 = vector.shape_cast %132 : vector<1x8x16xf32> to vector<8x16xf32>
    %134 = vector.shape_cast %131 : vector<8x16xf32> to vector<1x8x16xf32>
    tpu.vector_store %arg17[%c0_59, %c24, %c0_60], %134 {strides = array<i32>} : memref<1x32x16xf32, #tpu.memory_space<vmem>>, vector<1x8x16xf32>,
    return
  }
  func.func @transform_0(%arg0: i32, %arg1: i32) -> (i32, i32, i32, i32) {
    %c0_i32 = arith.constant 0 : i32
    %c0_i32_0 = arith.constant 0 : i32
    %c0_i32_1 = arith.constant 0 : i32
    return %arg0, %arg1, %c0_i32, %c0_i32_0 : i32, i32, i32, i32
  }
  func.func @transform_1(%arg0: i32, %arg1: i32) -> (i32, i32) {
    %c0_i32 = arith.constant 0 : i32
    %c0_i32_0 = arith.constant 0 : i32
    %c0_i32_1 = arith.constant 0 : i32
    return %c0_i32, %c0_i32_0 : i32, i32
  }
  func.func @transform_2(%arg0: i32, %arg1: i32) -> (i32, i32) {
    %c0_i32 = arith.constant 0 : i32
    %c0_i32_0 = arith.constant 0 : i32
    %c0_i32_1 = arith.constant 0 : i32
    return %c0_i32, %c0_i32_0 : i32, i32
  }
  func.func @transform_3(%arg0: i32, %arg1: i32) -> (i32, i32) {
    %c0_i32 = arith.constant 0 : i32
    %c0_i32_0 = arith.constant 0 : i32
    %c0_i32_1 = arith.constant 0 : i32
    return %c0_i32, %c0_i32_0 : i32, i32
  }
  func.func @transform_4(%arg0: i32, %arg1: i32) -> (i32, i32) {
    %c0_i32 = arith.constant 0 : i32
    %c0_i32_0 = arith.constant 0 : i32
    %c0_i32_1 = arith.constant 0 : i32
    return %c0_i32, %c0_i32_0 : i32, i32
  }
  func.func @transform_5(%arg0: i32, %arg1: i32) -> (i32, i32) {
    %c0_i32 = arith.constant 0 : i32
    %c0_i32_0 = arith.constant 0 : i32
    %c0_i32_1 = arith.constant 0 : i32
    return %c0_i32, %c0_i32_0 : i32, i32
  }
  func.func @transform_6(%arg0: i32, %arg1: i32) -> (i32, i32) {
    %c0_i32 = arith.constant 0 : i32
    %c0_i32_0 = arith.constant 0 : i32
    %c0_i32_1 = arith.constant 0 : i32
    return %c0_i32, %c0_i32_0 : i32, i32
  }
  func.func @transform_7(%arg0: i32, %arg1: i32) -> (i32, i32) {
    %c0_i32 = arith.constant 0 : i32
    %c0_i32_0 = arith.constant 0 : i32
    %c0_i32_1 = arith.constant 0 : i32
    return %c0_i32, %c0_i32_0 : i32, i32
  }
  func.func @transform_8(%arg0: i32, %arg1: i32) -> (i32, i32) {
    %c0_i32 = arith.constant 0 : i32
    %c0_i32_0 = arith.constant 0 : i32
    %c0_i32_1 = arith.constant 0 : i32
    return %c0_i32, %c0_i32_0 : i32, i32
  }
  func.func @transform_9(%arg0: i32, %arg1: i32) -> (i32, i32) {
    %c0_i32 = arith.constant 0 : i32
    %c0_i32_0 = arith.constant 0 : i32
    %c0_i32_1 = arith.constant 0 : i32
    return %c0_i32, %c0_i32_0 : i32, i32
  }
  func.func @transform_10(%arg0: i32, %arg1: i32) -> (i32, i32) {
    %c0_i32 = arith.constant 0 : i32
    %c0_i32_0 = arith.constant 0 : i32
    %c0_i32_1 = arith.constant 0 : i32
    return %c0_i32, %c0_i32_0 : i32, i32
  }
  func.func @transform_11(%arg0: i32, %arg1: i32) -> (i32, i32) {
    %c0_i32 = arith.constant 0 : i32
    %c0_i32_0 = arith.constant 0 : i32
    %c0_i32_1 = arith.constant 0 : i32
    return %c0_i32, %c0_i32_0 : i32, i32
  }
  func.func @transform_12(%arg0: i32, %arg1: i32) -> (i32, i32) {
    %c0_i32 = arith.constant 0 : i32
    %c0_i32_0 = arith.constant 0 : i32
    %c0_i32_1 = arith.constant 0 : i32
    return %c0_i32, %c0_i32_0 : i32, i32
  }
  func.func @transform_13(%arg0: i32, %arg1: i32) -> (i32, i32) {
    %c0_i32 = arith.constant 0 : i32
    %c0_i32_0 = arith.constant 0 : i32
    %c0_i32_1 = arith.constant 0 : i32
    return %c0_i32, %c0_i32_0 : i32, i32
  }
  func.func @transform_14(%arg0: i32, %arg1: i32) -> (i32, i32) {
    %c0_i32 = arith.constant 0 : i32
    %c0_i32_0 = arith.constant 0 : i32
    %c0_i32_1 = arith.constant 0 : i32
    return %c0_i32, %c0_i32_0 : i32, i32
  }
  func.func @transform_15(%arg0: i32, %arg1: i32) -> (i32, i32, i32) {
    %c0_i32 = arith.constant 0 : i32
    %c0_i32_0 = arith.constant 0 : i32
    return %arg0, %c0_i32, %arg1 : i32, i32, i32
  }
}

</mosaic_0001>

<bundles_post_ra>
// kernel: tpu_custom_call.1
= control target key start
LH: loop header
LB: loop body
LE: loop exit
PB: predicated region body
PF: predicated region fallthrough
CT: control target
= control target key end

     0   :  { %s1662_s18 = smov 0   ;;  %s1664_s19 = smov 0   ;;  %s1955_s0 = inlined_call_operand.vmem [shape: bf16[2,1,16,28], index: 0, kind: input, shape index: {}]   ;;  %s1956_s1 = inlined_call_operand.vmem [shape: bf16[8,16], index: 1, kind: input, shape index: {}]   ;;  %s1957_s2 = inlined_call_operand.vmem [shape: f32[8,1], index: 2, kind: input, shape index: {}]   ;;  %s1958_s3 = inlined_call_operand.vmem [shape: bf16[8,24], index: 3, kind: input, shape index: {}]   ;;  %s1959_s4 = inlined_call_operand.vmem [shape: bf16[8,48], index: 4, kind: input, shape index: {}]   ;;  %s1960_s5 = inlined_call_operand.vmem [shape: f32[8,1], index: 5, kind: input, shape index: {}]   ;;  %s1961_s6 = inlined_call_operand.vmem [shape: bf16[8,40], index: 6, kind: input, shape index: {}]   ;;  %s1962_s7 = inlined_call_operand.vmem [shape: bf16[8,40], index: 7, kind: input, shape index: {}]   ;;  %s1963_s8 = inlined_call_operand.vmem [shape: bf16[8,80], index: 8, kind: input, shape index: {}]   ;;  %s1964_s9 = inlined_call_operand.vmem [shape: f32[8,1], index: 9, kind: input, shape index: {}]   ;;  %s1965_s10 = inlined_call_operand.vmem [shape: bf16[8,56], index: 10, kind: input, shape index: {}]   ;;  %s1966_s11 = inlined_call_operand.vmem [shape: bf16[8,56], index: 11, kind: input, shape index: {}]   ;;  %s1967_s12 = inlined_call_operand.vmem [shape: bf16[8,56], index: 12, kind: input, shape index: {}]   ;;  %s1968_s13 = inlined_call_operand.vmem [shape: bf16[8,112], index: 13, kind: input, shape index: {}]   ;;  %s1969_s14 = inlined_call_operand.vmem [shape: f32[8,1], index: 14, kind: input, shape index: {}]   ;;  %s1970_s15 = inlined_call_operand.vmem [shape: f32[2,32,16], index: 15, kind: output, shape index: {}]  }
   0x1   :  { %s1666_s20 = smov 0  }
   0x2 LB: > { %s37_s21 = sadd.s32 1, %s1566_s19  ;;  %p1309_p0 = scmp.ge.s32.totalorder %s1570_s20, 1  ;;  %s1570_s20 = sphi %s1666_s20, %s25_s20   ;;  %s1566_s19 = sphi %s1664_s19, %s1974_s19   ;;  %s1562_s18 = sphi %s1662_s18, %s1973_s18  }
   0x3   : > { %p39_p1 = scmp.ge.s32.totalorder %s37_s21, 2  ;;  %p457_p2 = scmp.lt.s32.totalorder %s1570_s20, 3 }
   0x5   : > { %s1976_s21 = smov (%p39_p1, %s37_s21), 0  ;;  %p458_p3 = pnand %p1309_p0, %p457_p2 }
   0x6   : > { %p512_p4 = scmp.lt.s32.totalorder (!%p458_p3), %s1562_s18, 1  ;;  %v1572_v0 = vmov (!%p458_p3), 0.0   ;;  %s1573_s26 = smov (!%p458_p3), 3   ;;  %vm1574_vm0 = vmmov (!%p458_p3), 0   ;;  %v574_v2 = vld [vmem:[%s1957_s2] sm:$0xff] (!%p458_p3)  ;;  %v1575_v3 = vmov (!%p458_p3), 0   ;;  %v530_v9 = vlaneseq (!%p458_p3) }
   0x7   : > { %461 = sbr.rel (%p458_p3) target bundleno = 2060 (0x80c), region = 80  ;;  %1375 = vmatprep.subr.bf16.mxu1 (!%p458_p3), %v1572_v0  ;;  %1399 = vmatprep.subr.bf16.mxu0 (!%p458_p3), %v1572_v0  ;;  %vm548_vm1 = vcmask (!%p458_p3), 23552   ;;  %vm552_vm2 = vcmask (!%p458_p3), 252928   ;;  %s1576_s29 = smov (!%p458_p3), 125   ;;  %v575_v8 = vld [vmem:[%s1956_s1] sm:$0xf] (!%p458_p3) }
   0x8   : > { %1377 = vmatprep.mubr.msk.bf16.mxu1 (!%p458_p3), %vm1574_vm0, %v1572_v0  ;;  %1405 = vmatprep.mubr.msk.bf16.mxu0 (!%p458_p3), %vm1574_vm0, %v1572_v0  ;;  %vm576_vm3 = vcmask (!%p458_p3), 130048   ;;  %v531_v10 = vand.u32 (!%p458_p3), 127, %v530_v9  ;;  %s1577_s17 = smov (!%p458_p3), 126   ;;  %s1579_s23 = smov (!%p458_p3), 123   ;;  %v668_v25 = vld [vmem:[%s1960_s5] sm:$0xff] (!%p458_p3)  ;;  %vm656_vm7 = vcmask (!%p458_p3), 1043456  }
   0x9   : > { %1545 = vset.pattern.permute.xlu1 (!%p458_p3), %v1575_v3  ;;  %1546 = vset.pattern.permute.xlu0 (!%p458_p3), %v1575_v3  ;;  %v669_v33 = vld [vmem:[%s1958_s3] sm:$0xf] (!%p458_p3)  ;;  %vm670_vm8 = vcmask (!%p458_p3), 195584   ;;  %vm723_vm9 = vcmask (!%p458_p3), 392192   ;;  %s1580_s24 = smov (!%p458_p3), 127   ;;  %vm820_vm10 = vcmask (!%p458_p3), 326656  }
   0xa   : > { %622 = vperm.xlu1 (!%p458_p3), %1545, %v574_v2   ;;  %v535_v11 = vadd.s32 (!%p458_p3), 4294967290, %v531_v10  ;;  %v722_v36 = vld [vmem:[%s1959_s4] sm:$0xf] (!%p458_p3)  ;;  %vm932_vm11 = vcmask (!%p458_p3), 654336   ;;  %s1581_s30 = smov (!%p458_p3), 122   ;;  %vm1018_vm12 = vcmask (!%p458_p3), 457728  }
   0xb   : > { %v807_v49 = vld [vmem:[%s1964_s9] sm:$0xff] (!%p458_p3)  ;;  %vm1168_vm13 = vcmask (!%p458_p3), 916480  }
   0xc   : > { %vm536_vm4 = vcmp.ge.s32.totalorder (!%p458_p3), %v535_v11, 0  ;;  %vm537_vm5 = vcmp.lt.s32.totalorder (!%p458_p3), %v535_v11, 16  ;;  %v1016_v13 = vld [vmem:[%s1969_s14] sm:$0xff] (!%p458_p3) }
   0xd   : > { %vm1712_vm6 = vmand (!%p458_p3), %vm536_vm4, %vm537_vm5 }
   0xe   : > { %s1978_s18 = smov (!%p512_p4, %s1562_s18), 1 }
   0xf   : > { %s1327_s22 = sshll.u32 %s1978_s18, 3 }
  0x10   : > { %s520_s25 = scalar_lea.vmem %s1955_s0, %s1327_s22  ;;  %s1578_s22 = smov 124  }
  0x11   : > { %v1547_v1 = vld [vmem:[%s520_s25] sm:$0xff]  }
  0x12   : > { %546 = vrot.lane.b32.xlu0 %v1547_v1, %s1573_s26 }
  0x84   : > { %v547_v4 = vpop.permute.xlu0 %546 }
  0x85   : > { %v551_v5 = vsel %vm548_vm1, 0, %v547_v4  ;;  %v808_v4 = vld [vmem:[%s1961_s6] sm:$0xf] }
  0x86   : > { %v1698_v6 = vsel %vm552_vm2, %v551_v5, 0 }
  0x87   : > { %562 = vrot.lane.b32.xlu0 %v1698_v6, %s1576_s29 }
  0x89   : > { %v623_v12 = vpop.permute.xlu1 %622 }
  0xf9   : > { %v1702_v7 = vpop.permute.xlu0 %562 }
  0xfa   : > { %1376 = vmatpush3.bf16.msra.mxu1 %v1702_v7 }
  0xfb   : > { %1381 = vmatprep.subr.bf16.mxu1 %v1572_v0 }
  0xfd   : > { %1378 = vmatmul.mubr.msk.bf16.vlgmr.msra.gmra.mrb[0].mxu1 %vm576_vm3, %v575_v8 }
  0xfe   : > { %1385 = vmatprep.mubr.msk.bf16.mxu1 %vm1574_vm0, %v1572_v0 }
 0x1d0   : > { %v614_v14 = vpop.f32.mrb[0].mxu1 }
 0x1d1   : > { %v1716_v15 = vadd.f32 %v623_v12, %v614_v14  ;;  %v1379_v16 = vpop.f32.mrb[1].mxu1  ;;  %v873_v12 = vld [vmem:[%s1962_s7] sm:$0xf] }
 0x1d2   : > { %v617_v17 = vpop.f32.mrb[2].mxu1 }
 0x1d3   : > { %v634_v18 = vsel %vm1712_vm6, %v1716_v15, 0.0  ;;  %v1380_v19 = vpop.f32.mrb[3].mxu1  ;;  %v931_v17 = vld [vmem:[%s1963_s8] sm:$0xf] }
 0x1d4   : > { %v635_v20 = vpack.c.bf16 %v634_v18, %v634_v18 }
 0x1d6   : > { %637 = vrot.lane.b32.xlu1 %v635_v20, %s1573_s26 }
 0x248   : > { %v638_v21 = vpop.permute.xlu1 %637 }
 0x249   : > { %v640_v22 = vsel %vm548_vm1, 0, %v638_v21 }
 0x24a   : > { %v1724_v23 = vsel %vm552_vm2, %v640_v22, 0 }
 0x24b   : > { %646 = vrot.lane.b32.xlu0 %v1724_v23, %s1577_s17  ;;  %v643_v24 = vrot.slane %v1724_v23, 4 }
 0x24d   : > { %648 = vrot.lane.b32.xlu1 %v643_v24, %s1576_s29 }
 0x24f   : > { %650 = vrot.lane.b32.xlu0 %v1724_v23, %s1578_s22 }
 0x251   : > { %652 = vrot.lane.b32.xlu1 %v643_v24, %s1579_s23 }
 0x253   : > { %559 = vrot.lane.b32.xlu0 %v1698_v6, %s1577_s17 }
 0x255   : > { %565 = vrot.lane.b32.xlu1 %v1698_v6, %s1578_s22 }
 0x257   : > { %718 = vperm.xlu0 %1546, %v668_v25  }
 0x2bd   : > { %v647_v26 = vpop.permute.xlu0 %646 }
 0x2bf   : > { %v649_v27 = vpop.permute.xlu1 %648 }
 0x2c0   : > { %v1741_v28 = vsel %vm656_vm7, %v647_v26, %v649_v27 }
 0x2c1   : > { %1382 = vmatpush3.bf16.msra.mxu1 %v1741_v28  ;;  %v651_v29 = vpop.permute.xlu0 %650  ;;  %v878_v5 = vrot.slane %v1741_v28, 4 }
 0x2c2   : > { %1383 = vmatprep.subr.bf16.mxu1 %v1572_v0 }
 0x2c3   : > { %v653_v30 = vpop.permute.xlu1 %652 }
 0x2c4   : > { %v1746_v31 = vsel %vm656_vm7, %v651_v29, %v653_v30 }
 0x2c5   : > { %v674_v32 = vsel %vm656_vm7, %v1746_v31, 0  ;;  %v1754_v34 = vpop.permute.xlu0 %559  ;;  %v880_v8 = vrot.slane %v1746_v31, 4 }
 0x2c6   : > { %1384 = vmatpush3.bf16.msra.mxu1 %v674_v32 }
 0x2c7   : > { %1389 = vmatprep.subr.bf16.mxu1 %v1572_v0  ;;  %v1762_v35 = vpop.permute.xlu1 %565  ;;  %v881_v10 = vsel %vm656_vm7, %v878_v5, %v880_v8  ;;  %v888_v11 = vsel %vm656_vm7, %v880_v8, 0 }
 0x2c9   : > { %1386 = vmatmul.mubr.msk.bf16.vlgmr.msra.gmra.mrb[4].mxu1 %vm670_vm8, %v669_v33  ;;  %v626_v33 = vmax.f32 %v1716_v15, 0.0 }
 0x2ca   : > { %1390 = vmatpush3.bf16.msra.mxu1 %v1754_v34  ;;  %1395 = vmatprep.mubr.msk.bf16.mxu1 %vm1574_vm0, %v1572_v0 }
 0x2cb   : > { %1391 = vmatprep.subr.bf16.mxu1 %v1572_v0 }
 0x2ce   : > { %1392 = vmatpush3.bf16.msra.mxu1 %v1702_v7 }
 0x2cf   : > { %1393 = vmatprep.subr.bf16.mxu1 %v1572_v0 }
 0x2d2   : > { %1394 = vmatpush3.bf16.msra.mxu1 %v1762_v35 }
 0x2d3   : > { %1433 = vmatprep.subr.bf16.mxu1 %v1572_v0 }
 0x2d5   : > { %1396 = vmatmul.mubr.msk.bf16.vlgmr.msra.gmra.mrb[4].mxu1 %vm723_vm9, %v722_v36 }
 0x2d6   : > { %1441 = vmatprep.mubr.msk.bf16.mxu1 %vm1574_vm0, %v1572_v0  ;;  %v719_v37 = vpop.permute.xlu0 %718 }
 0x3a8   : > { %v761_v38 = vpop.f32.mrb[4].mxu1 }
 0x3a9   : > { %v1771_v39 = vadd.f32 %v761_v38, %v719_v37  ;;  %v1397_v40 = vpop.f32.mrb[5].mxu1 }
 0x3aa   : > { %v764_v41 = vpop.f32.mrb[6].mxu1 }
 0x3ab   : > { %v774_v42 = vsel %vm1712_vm6, %v1771_v39, 0.0  ;;  %v1398_v43 = vpop.f32.mrb[7].mxu1  ;;  %v768_v32 = vmax.f32 %v1771_v39, 0.0 }
 0x3ac   : > { %v775_v44 = vpack.c.bf16 %v774_v42, %v774_v42  ;;  %v1017_v43 = vld [vmem:[%s1965_s10] sm:$0xf] }
 0x3ae   : > { %777 = vrot.lane.b32.xlu1 %v775_v44, %s1573_s26 }
 0x420   : > { %v778_v45 = vpop.permute.xlu1 %777 }
 0x421   : > { %v780_v46 = vsel %vm548_vm1, 0, %v778_v45  ;;  %v1167_v45 = vld [vmem:[%s1968_s13] sm:$0xf] }
 0x422   : > { %v1779_v47 = vsel %vm552_vm2, %v780_v46, 0 }
 0x423   : > { %786 = vrot.lane.b32.xlu0 %v1779_v47, %s1577_s17  ;;  %v783_v48 = vrot.slane %v1779_v47, 4 }
 0x425   : > { %784 = vrot.lane.b32.xlu1 %v783_v48, %s1580_s24 }
 0x427   : > { %790 = vrot.lane.b32.xlu0 %v1779_v47, %s1578_s22 }
 0x429   : > { %788 = vrot.lane.b32.xlu1 %v783_v48, %s1576_s29 }
 0x42b   : > { %644 = vrot.lane.b32.xlu0 %v643_v24, %s1580_s24 }
 0x42d   : > { %792 = vrot.lane.b32.xlu1 %v783_v48, %s1579_s23 }
 0x42f   : > { %568 = vrot.lane.b32.xlu0 %v1698_v6, %s1579_s23 }
 0x431   : > { %556 = vrot.lane.b32.xlu1 %v1698_v6, %s1580_s24 }
 0x435   : > { %869 = vperm.xlu1 %1545, %v807_v49  }
 0x495   : > { %v787_v50 = vpop.permute.xlu0 %786 }
 0x497   : > { %v785_v51 = vpop.permute.xlu1 %784 }
 0x498   : > { %v1799_v52 = vsel %vm656_vm7, %v1779_v47, %v785_v51  ;;  %v1071_v51 = vld [vmem:[%s1966_s11] sm:$0xf] }
 0x499   : > { %v791_v53 = vpop.permute.xlu0 %790  ;;  %v813_v56 = vrot.slane %v1799_v52, 4 }
 0x49b   : > { %v789_v54 = vpop.permute.xlu1 %788 }
 0x49c   : > { %v1802_v55 = vsel %vm656_vm7, %v787_v50, %v789_v54  ;;  %v1119_v54 = vld [vmem:[%s1967_s12] sm:$0xf] }
 0x49d   : > { %v814_v57 = vrot.slane %v1802_v55, 4  ;;  %v645_v61 = vpop.permute.xlu0 %644 }
 0x49e   : > { %v1815_v1 = vsel %vm656_vm7, %v1724_v23, %v645_v61 }
 0x49f   : > { %v793_v58 = vpop.permute.xlu1 %792  ;;  %v815_v59 = vsel %vm656_vm7, %v813_v56, %v814_v57  ;;  %v877_v2 = vrot.slane %v1815_v1, 4 }
 0x4a0   : > { %v1808_v60 = vsel %vm656_vm7, %v791_v53, %v793_v58  ;;  %1400 = vmatpush3.bf16.msra.mxu0 %v815_v59 }
 0x4a1   : > { %v816_v62 = vrot.slane %v1808_v60, 4  ;;  %1401 = vmatprep.subr.bf16.mxu0 %v1572_v0  ;;  %v879_v9 = vsel %vm656_vm7, %v877_v2, %v878_v5  ;;  %v569_v16 = vpop.permute.xlu0 %568 }
 0x4a3   : > { %v817_v63 = vsel %vm656_vm7, %v814_v57, %v816_v62  ;;  %v825_v3 = vsel %vm656_vm7, %v816_v62, 0  ;;  %v557_v14 = vpop.permute.xlu1 %556 }
 0x4a4   : > { %1402 = vmatpush3.bf16.msra.mxu0 %v817_v63 }
 0x4a5   : > { %1403 = vmatprep.subr.bf16.mxu0 %v1572_v0 }
 0x4a8   : > { %1404 = vmatpush3.bf16.msra.mxu0 %v825_v3 }
 0x4a9   : > { %1409 = vmatprep.subr.bf16.mxu0 %v1572_v0 }
 0x4ab   : > { %1406 = vmatmul.mubr.msk.bf16.vlgmr.msra.gmra.mrb[0].mxu0 %vm820_vm10, %v808_v4 }
 0x4ac   : > { %1410 = vmatpush3.bf16.msra.mxu0 %v879_v9  ;;  %1415 = vmatprep.mubr.msk.bf16.mxu0 %vm1574_vm0, %v1572_v0 }
 0x4ad   : > { %1411 = vmatprep.subr.bf16.mxu0 %v1572_v0 }
 0x4b0   : > { %1412 = vmatpush3.bf16.msra.mxu0 %v881_v10 }
 0x4b1   : > { %1413 = vmatprep.subr.bf16.mxu0 %v1572_v0 }
 0x4b4   : > { %1414 = vmatpush3.bf16.msra.mxu0 %v888_v11  ;;  %v870_v18 = vpop.permute.xlu1 %869 }
 0x4b5   : > { %1419 = vmatprep.subr.bf16.mxu0 %v1572_v0 }
 0x4b7   : > { %1416 = vmatmul.mubr.msk.bf16.vlgmr.msra.gmra.mrb[0].mxu0 %vm820_vm10, %v873_v12 }
 0x4b8   : > { %1420 = vmatpush3.bf16.msra.mxu0 %v557_v14  ;;  %1429 = vmatprep.mubr.msk.bf16.mxu0 %vm1574_vm0, %v1572_v0 }
 0x4b9   : > { %1421 = vmatprep.subr.bf16.mxu0 %v1572_v0 }
 0x4bc   : > { %1422 = vmatpush3.bf16.msra.mxu0 %v1754_v34 }
 0x4bd   : > { %1423 = vmatprep.subr.bf16.mxu0 %v1572_v0 }
 0x4c0   : > { %1424 = vmatpush3.bf16.msra.mxu0 %v1702_v7 }
 0x4c1   : > { %1425 = vmatprep.subr.bf16.mxu0 %v1572_v0 }
 0x4c4   : > { %1426 = vmatpush3.bf16.msra.mxu0 %v1762_v35 }
 0x4c5   : > { %1427 = vmatprep.subr.bf16.mxu0 %v1572_v0 }
 0x4c8   : > { %1428 = vmatpush3.bf16.msra.mxu0 %v569_v16 }
 0x4c9   : > { %1469 = vmatprep.subr.bf16.mxu0 %v1572_v0 }
 0x4cb   : > { %1430 = vmatmul.mubr.msk.bf16.vlgmr.msra.gmra.mrb[0].mxu0 %vm932_vm11, %v931_v17 }
 0x4cc   : > { %1470 = vmatpush3.bf16.msra.mxu0 %v1698_v6  ;;  %1483 = vmatprep.mubr.msk.bf16.mxu0 %vm1574_vm0, %v1572_v0 }
 0x4cd   : > { %1471 = vmatprep.subr.bf16.mxu0 %v1572_v0 }
 0x4d0   : > { %1472 = vmatpush3.bf16.msra.mxu0 %v557_v14 }
 0x4d1   : > { %1473 = vmatprep.subr.bf16.mxu0 %v1572_v0 }
 0x4d4   : > { %1474 = vmatpush3.bf16.msra.mxu0 %v1754_v34 }
 0x4d5   : > { %1475 = vmatprep.subr.bf16.mxu0 %v1572_v0 }
 0x4d8   : > { %1476 = vmatpush3.bf16.msra.mxu0 %v1702_v7 }
 0x4d9   : > { %1477 = vmatprep.subr.bf16.mxu0 %v1572_v0 }
 0x4dc   : > { %1478 = vmatpush3.bf16.msra.mxu0 %v1762_v35 }
 0x4dd   : > { %1479 = vmatprep.subr.bf16.mxu0 %v1572_v0 }
 0x4e0   : > { %1480 = vmatpush3.bf16.msra.mxu0 %v569_v16 }
 0x4e1   : > { %1481 = vmatprep.subr.bf16.mxu0 %v1572_v0 }
 0x59e   : > { %v970_v19 = vpop.f32.mrb[0].mxu0 }
 0x59f   : > { %v1488_v20 = vadd.f32 %v970_v19, %v870_v18  ;;  %v1431_v21 = vpop.f32.mrb[1].mxu0 }
 0x5a0   : > { %v973_v22 = vpop.f32.mrb[2].mxu0 }
 0x5a1   : > { %v983_v24 = vsel %vm1712_vm6, %v1488_v20, 0.0  ;;  %v1432_v25 = vpop.f32.mrb[3].mxu0 }
 0x5a2   : > { %v984_v26 = vpack.c.bf16 %v983_v24, %v983_v24 }
 0x5a4   : > { %986 = vrot.lane.b32.xlu0 %v984_v26, %s1573_s26 }
 0x616   : > { %v987_v7 = vpop.permute.xlu0 %986 }
 0x617   : > { %v989_v27 = vsel %vm548_vm1, 0, %v987_v7 }
 0x618   : > { %v990_v29 = vsel %vm552_vm2, %v989_v27, 0 }
 0x619   : > { %995 = vrot.lane.b32.xlu0 %v990_v29, %s1577_s17  ;;  %v992_v30 = vrot.slane %v990_v29, 4 }
 0x61b   : > { %993 = vrot.lane.b32.xlu1 %v992_v30, %s1580_s24 }
 0x61d   : > { %999 = vrot.lane.b32.xlu0 %v990_v29, %s1578_s22  ;;  %s1328_s22 = sshll.u32 %s1978_s18, 5 }
 0x61e   : > { %s1909_s28 = scalar_lea.vmem %s1970_s15, %s1328_s22 }
 0x61f   : > { %997 = vrot.lane.b32.xlu1 %v992_v30, %s1576_s29 }
 0x621   : > { %1003 = vrot.lane.b32.xlu0 %v990_v29, %s1581_s30 }
 0x623   : > { %1001 = vrot.lane.b32.xlu1 %v992_v30, %s1579_s23 }
 0x625   : > { %654 = vrot.lane.b32.xlu0 %v1724_v23, %s1581_s30  ;;  %v977_v23 = vmax.f32 %v1488_v20, 0.0 }
 0x627   : > { %794 = vrot.lane.b32.xlu1 %v1779_v47, %s1581_s30 }
 0x629   : > { %1067 = vperm.xlu0 %1546, %v1016_v13  }
 0x62b   : > { %571 = vrot.lane.b32.xlu1 %v1698_v6, %s1581_s30 }
 0x62d   : > { %770 = vrot.lane.b32.xlu0 %v768_v32, %s1581_s30 }
 0x62f   : > { %628 = vrot.lane.b32.xlu1 %v626_v33, %s1581_s30 }
 0x633   : > { %979 = vrot.lane.b32.xlu1 %v977_v23, %s1581_s30 }
 0x68b   : > { %v996_v34 = vpop.permute.xlu0 %995 }
 0x68d   : > { %v994_v35 = vpop.permute.xlu1 %993 }
 0x68e   : > { %v1006_v36 = vsel %vm656_vm7, %v990_v29, %v994_v35 }
 0x68f   : > { %1434 = vmatpush3.bf16.msra.mxu1 %v1006_v36  ;;  %v1000_v37 = vpop.permute.xlu0 %999 }
 0x690   : > { %1435 = vmatprep.subr.bf16.mxu1 %v1572_v0 }
 0x691   : > { %v998_v38 = vpop.permute.xlu1 %997 }
 0x692   : > { %v1010_v6 = vsel %vm656_vm7, %v996_v34, %v998_v38 }
 0x693   : > { %1436 = vmatpush3.bf16.msra.mxu1 %v1010_v6  ;;  %v1004_v40 = vpop.permute.xlu0 %1003 }
 0x694   : > { %1437 = vmatprep.subr.bf16.mxu1 %v1572_v0  ;;  %v1023_v42 = vsel %vm656_vm7, %v1004_v40, 0 }
 0x695   : > { %v1002_v15 = vpop.permute.xlu1 %1001 }
 0x696   : > { %v1014_v39 = vsel %vm656_vm7, %v1000_v37, %v1002_v15 }
 0x697   : > { %1438 = vmatpush3.bf16.msra.mxu1 %v1014_v39  ;;  %v655_v47 = vpop.permute.xlu0 %654 }
 0x698   : > { %1439 = vmatprep.subr.bf16.mxu1 %v1572_v0  ;;  %v1124_v53 = vsel %vm656_vm7, %v655_v47, 0 }
 0x699   : > { %v795_v41 = vpop.permute.xlu1 %794 }
 0x69a   : > { %v1076_v50 = vsel %vm656_vm7, %v795_v41, 0 }
 0x69b   : > { %1440 = vmatpush3.bf16.msra.mxu1 %v1023_v42 }
 0x69c   : > { %1445 = vmatprep.subr.bf16.mxu1 %v1572_v0 }
 0x69d   : > { %v572_v44 = vpop.permute.xlu1 %571 }
 0x69e   : > { %1482 = vmatpush3.bf16.msra.mxu0 %v572_v44  ;;  %1442 = vmatmul.mubr.msk.bf16.vlgmr.msra.gmra.mrb[8].mxu1 %vm1018_vm12, %v1017_v43 }
 0x69f   : > { %1446 = vmatpush3.bf16.msra.mxu1 %v1799_v52  ;;  %1453 = vmatprep.mubr.msk.bf16.mxu1 %vm1574_vm0, %v1572_v0 }
 0x6a0   : > { %1447 = vmatprep.subr.bf16.mxu1 %v1572_v0 }
 0x6a1   : > { %v629_v46 = vpop.permute.xlu1 %628  ;;  %1484 = vmatmul.mubr.msk.bf16.vlgmr.msra.gmra.mrb[4].mxu0 %vm1168_vm13, %v1167_v45 }
 0x6a2   : > { %631 = vst.msk [vmem:[%s1909_s28] sm:$0xff] %vm576_vm3, %v629_v46 }
 0x6a3   : > { %1448 = vmatpush3.bf16.msra.mxu1 %v1802_v55 }
 0x6a4   : > { %1449 = vmatprep.subr.bf16.mxu1 %v1572_v0 }
 0x6a5   : > { %v980_v48 = vpop.permute.xlu1 %979 }
 0x6a6   : > { %982 = vst.msk [vmem:[%s1909_s28 + $0x10] sm:$0xff] %vm576_vm3, %v980_v48 }
 0x6a7   : > { %1450 = vmatpush3.bf16.msra.mxu1 %v1808_v60 }
 0x6a8   : > { %v1068_v49 = vpop.permute.xlu0 %1067  ;;  %1451 = vmatprep.subr.bf16.mxu1 %v1572_v0 }
 0x6ab   : > { %1452 = vmatpush3.bf16.msra.mxu1 %v1076_v50 }
 0x6ac   : > { %v771_v52 = vpop.permute.xlu0 %770  ;;  %1457 = vmatprep.subr.bf16.mxu1 %v1572_v0 }
 0x6ad   : > { %773 = vst.msk [vmem:[%s1909_s28 + $0x8] sm:$0xff] %vm576_vm3, %v771_v52 }
 0x6ae   : > { %1454 = vmatmul.mubr.msk.bf16.vlgmr.msra.gmra.mrb[8].mxu1 %vm1018_vm12, %v1071_v51 }
 0x6af   : > { %1458 = vmatpush3.bf16.msra.mxu1 %v1815_v1  ;;  %1465 = vmatprep.mubr.msk.bf16.mxu1 %vm1574_vm0, %v1572_v0 }
 0x6b0   : > { %1459 = vmatprep.subr.bf16.mxu1 %v1572_v0 }
 0x6b3   : > { %1460 = vmatpush3.bf16.msra.mxu1 %v1741_v28 }
 0x6b4   : > { %1461 = vmatprep.subr.bf16.mxu1 %v1572_v0 }
 0x6b7   : > { %1462 = vmatpush3.bf16.msra.mxu1 %v1746_v31 }
 0x6b8   : > { %1463 = vmatprep.subr.bf16.mxu1 %v1572_v0 }
 0x6bb   : > { %1464 = vmatpush3.bf16.msra.mxu1 %v1124_v53 }
 0x6be   : > { %1466 = vmatmul.mubr.msk.bf16.vlgmr.msra.gmra.mrb[8].mxu1 %vm1018_vm12, %v1119_v54 }
 0x774   : > { %v1206_v55 = vpop.f32.mrb[4].mxu0 }
 0x775   : > { %v1485_v56 = vpop.f32.mrb[5].mxu0 }
 0x776   : > { %v1209_v57 = vpop.f32.mrb[6].mxu0 }
 0x777   : > { %v1486_v28 = vpop.f32.mrb[7].mxu0 }
 0x791   : > { %v1160_v58 = vpop.f32.mrb[8].mxu1 }
 0x792   : > { %v1489_v59 = vadd.f32 %v1160_v58, %v1068_v49  ;;  %v1467_v60 = vpop.f32.mrb[9].mxu1 }
 0x793   : > { %v1163_v31 = vpop.f32.mrb[10].mxu1 }
 0x794   : > { %v1490_v61 = vadd.f32 %v1489_v59, %v1206_v55  ;;  %v1468_v0 = vpop.f32.mrb[11].mxu1 }
 0x796   : > { %v1213_v62 = vmax.f32 %v1490_v61, 0.0 }
 0x798   : > { %1215 = vrot.lane.b32.xlu0 %v1213_v62, %s1581_s30 }
 0x80a   : > { %v1216_v63 = vpop.permute.xlu0 %1215 }
 0x80b   : > { %1218 = vst.msk [vmem:[%s1909_s28 + $0x18] sm:$0xff] %vm576_vm3, %v1216_v63 }
 0x80c PF: > { %s25_s20 = sadd.s32 1, %s1570_s20   ;;  %s1973_s18 = smov %s1566_s19 }
 0x80d   : > { %p22_p5 = scmp.ge.s32.totalorder %s25_s20, 4   ;;  %s1974_s19 = smov %s1976_s21 }
 0x80f   :  { %24 = sbr.rel (!%p22_p5) target bundleno = 2 (0x2), region = 110 }

</bundles_post_ra>
